<compile_context>
chip_gen: v5e
topology: v5e:2x2
jax: 0.10.0
libtpu: 0.0.40
codegen_flags: <defaults>
</compile_context>

<pallas_src>
import functools

import jax
import jax.numpy as jnp
from jax.experimental import pallas as pl
from jax.experimental.pallas import tpu as pltpu

DROPOUT_P = 0.2
VOCAB = 128    # vocab_size of the synthetic inner model (lane-dim friendly)
HIDDEN = 32
BATCH = 2
SRC_LEN = 8
TGT_LEN = 8

# Hardware PRNG only lowers on the real TPU backend.
_USE_HW_PRNG = jax.default_backend() == "tpu"


def _round_up(x, m):
    return (x + m - 1) // m * m


def _keep_threshold(p):
    # keep iff uint32 random bits >= p * 2^32  ->  P(keep) = 1 - p
    return min(int(round(float(p) * (1 << 32))), (1 << 32) - 1)


def _proj_dropout_hw_kernel(seed_ref, h_ref, w_ref, o_ref, *, p, train, threshold):
    """Fused projection + inverted dropout using the TPU hardware PRNG.

    seed_ref: SMEM scalar-prefetch (1,) int32
    h_ref:    (tile_m, H)  bf16 hidden states
    w_ref:    (H, tile_v)  bf16 output projection
    o_ref:    (tile_m, tile_v) f32 dropped-out logits
    """
    logits = jnp.dot(h_ref[...], w_ref[...], preferred_element_type=jnp.float32)
    if train and p > 0.0:
        # Per-tile seed so every grid step draws an independent mask.
        tile_id = pl.program_id(0) * pl.num_programs(1) + pl.program_id(1)
        pltpu.prng_seed(seed_ref[0] + tile_id)
        bits = pltpu.bitcast(pltpu.prng_random_bits(logits.shape), jnp.uint32)
        keep = bits >= jnp.array(threshold, dtype=jnp.uint32)
        logits = jnp.where(keep, logits * jnp.float32(1.0 / (1.0 - p)),
                           jnp.float32(0.0))
    o_ref[...] = logits.astype(o_ref.dtype)


def _proj_dropout_bits_kernel(h_ref, w_ref, bits_ref, o_ref, *, p, train, threshold):
    """Portable fallback: dropout bits are a tiled uint32 input (works in interpret)."""
    logits = jnp.dot(h_ref[...], w_ref[...], preferred_element_type=jnp.float32)
    if train and p > 0.0:
        keep = bits_ref[...] >= jnp.array(threshold, dtype=jnp.uint32)
        logits = jnp.where(keep, logits * jnp.float32(1.0 / (1.0 - p)),
                           jnp.float32(0.0))
    o_ref[...] = logits.astype(o_ref.dtype)


def _pick_tiles(M, H, V):
    # Vocab tile: lane-dense multiple of 128 dividing V, else the full dim.
    tile_v = V
    if V % 128 == 0:
        for cand in (1024, 512, 256, 128):
            if V % cand == 0:
                tile_v = cand
                break
    # Row tile: as large as possible under a conservative VMEM budget that is safe
    # on v5e (16 MiB scoped default), v6e (32 MiB) and v7x (64 MiB physical).
    tile_m = min(512, _round_up(M, 8))

    def tile_bytes(tm):
        h_b = tm * H * 2            # bf16 activations
        w_b = H * tile_v * 2        # bf16 weights
        o_b = tm * tile_v * 4       # f32 output
        r_b = tm * tile_v * 4       # uint32 bits / f32 mask temp
        return 2 * (h_b + w_b + r_b) + 2 * o_b   # double-buffered pipeline

    budget = 10 * 1024 * 1024
    while tile_m > 8 and tile_bytes(tile_m) > budget:
        tile_m //= 2
    tile_m = max(8, _round_up(tile_m, 8))
    return tile_m, tile_v


def projected_dropout(h2d, w, seed, *, p=DROPOUT_P, train=True):
    """h2d: (M, H) f32, w: (H, V) f32 -> (M, V) f32 logits with inverted dropout."""
    M, H = h2d.shape
    Hw, V = w.shape
    assert H == Hw

    tile_m, tile_v = _pick_tiles(M, H, V)
    M_pad = _round_up(M, tile_m)
    if M_pad != M:
        h2d = jnp.pad(h2d, ((0, M_pad - M), (0, 0)))
    grid = (M_pad // tile_m, V // tile_v)

    # bf16 matmul inputs (f32 accumulation in-kernel): halves HBM read bytes and
    # uses the bf16 MXU path on v5e/v6e/v7x.  Output stays f32 to match the module.
    h_bf = h2d.astype(jnp.bfloat16)
    w_bf = w.astype(jnp.bfloat16)

    threshold = _keep_threshold(p)
    cost = pl.CostEstimate(
        flops=2 * M_pad * H * V,
        transcendentals=0,
        bytes_accessed=(M_pad * H * 2 + H * V * 2 + M_pad * V * 4
                        + (0 if _USE_HW_PRNG else M_pad * V * 4)),
    )
    cparams = pltpu.CompilerParams(
        dimension_semantics=("parallel", "parallel"),
        vmem_limit_bytes=32 * 1024 * 1024,
    )
    out_shape = jax.ShapeDtypeStruct((M_pad, V), jnp.float32)

    if _USE_HW_PRNG:
        kernel = functools.partial(_proj_dropout_hw_kernel, p=float(p),
                                   train=bool(train), threshold=threshold)
        out = pl.pallas_call(
            kernel,
            out_shape=out_shape,
            grid_spec=pltpu.PrefetchScalarGridSpec(
                num_scalar_prefetch=1,
                grid=grid,
                in_specs=[
                    pl.BlockSpec((tile_m, H), lambda i, j, seed: (i, 0)),
                    pl.BlockSpec((H, tile_v), lambda i, j, seed: (0, j)),
                ],
                out_specs=pl.BlockSpec((tile_m, tile_v), lambda i, j, seed: (i, j)),
            ),
            compiler_params=cparams,
            cost_estimate=cost,
        )(jnp.asarray([seed], dtype=jnp.int32), h_bf, w_bf)
    else:
        # TODO(synk): portable fallback only — on real TPUs the hardware PRNG branch
        # above avoids this extra M*V*4-byte HBM read of precomputed random bits.
        bits = jax.random.bits(jax.random.PRNGKey(int(seed)), (M_pad, V),
                               dtype=jnp.uint32)
        kernel = functools.partial(_proj_dropout_bits_kernel, p=float(p),
                                   train=bool(train), threshold=threshold)
        out = pl.pallas_call(
            kernel,
            out_shape=out_shape,
            grid_spec=pltpu.PrefetchScalarGridSpec(
                num_scalar_prefetch=0,
                grid=grid,
                in_specs=[
                    pl.BlockSpec((tile_m, H), lambda i, j: (i, 0)),
                    pl.BlockSpec((H, tile_v), lambda i, j: (0, j)),
                    pl.BlockSpec((tile_m, tile_v), lambda i, j: (i, j)),
                ],
                out_specs=pl.BlockSpec((tile_m, tile_v), lambda i, j: (i, j)),
            ),
            compiler_params=cparams,
            cost_estimate=cost,
        )(h_bf, w_bf, bits)

    return out[:M] if M_pad != M else out


class SyntheticSeq2Seq:
    """Minimal stand-in for the wrapped `model` (has .vocab_size, returns (B,T,V))."""

    def __init__(self, vocab_size=VOCAB, hidden=HIDDEN):
        self.vocab_size = vocab_size
        self.hidden = hidden
        key = jax.random.PRNGKey(42)
        k1, k2, k3 = jax.random.split(key, 3)
        self.src_emb = 0.02 * jax.random.normal(k1, (vocab_size, hidden), jnp.float32)
        self.tgt_emb = 0.02 * jax.random.normal(k2, (vocab_size, hidden), jnp.float32)
        self.out_proj = 0.02 * jax.random.normal(k3, (hidden, vocab_size), jnp.float32)

    def hidden_states(self, src, tgt, tgt_mask=None):
        # Glue (embedding gathers / pooling) stays in plain JAX.
        # TODO(synk): the original inner model is arbitrary (e.g. a Transformer using
        # tgt_mask for causal attention); this synthetic stand-in has no attention,
        # so tgt_mask is accepted but unused.
        src_h = self.src_emb[src]                     # (B, S, H)
        tgt_h = self.tgt_emb[tgt]                     # (B, T, H)
        ctx = jnp.mean(src_h, axis=1, keepdims=True)  # (B, 1, H)
        return tgt_h + ctx                            # (B, T, H)


class DropoutWrapper:
    """JAX/Pallas equivalent of the PyTorch DropoutWrapper."""

    def __init__(self, model, dropout_p=DROPOUT_P):
        self.model = model
        self.dropout_p = float(dropout_p)
        self.vocab_size = model.vocab_size

    def forward(self, src, tgt, tgt_mask=None, *, seed=0, train=True):
        h = self.model.hidden_states(src, tgt, tgt_mask)   # (B, T, H)
        B, T, H = h.shape
        logits2d = projected_dropout(
            h.reshape(B * T, H), self.model.out_proj, seed,
            p=self.dropout_p, train=train)
        return logits2d.reshape(B, T, self.vocab_size)


if __name__ == "__main__":
    key = jax.random.PRNGKey(0)
    k_src, k_tgt = jax.random.split(key)
    src = jax.random.randint(k_src, (BATCH, SRC_LEN), 0, VOCAB, dtype=jnp.int32)
    tgt = jax.random.randint(k_tgt, (BATCH, TGT_LEN), 0, VOCAB, dtype=jnp.int32)
    tgt_mask = None

    model = SyntheticSeq2Seq(vocab_size=VOCAB, hidden=HIDDEN)
    wrapper = DropoutWrapper(model, dropout_p=DROPOUT_P)

    out = wrapper.forward(src, tgt, tgt_mask, seed=123, train=True)
    out = jax.block_until_ready(out)

    assert out.shape == (BATCH, TGT_LEN, VOCAB)
    assert out.dtype == jnp.float32
    print("KERNEL_OK")
</pallas_src>

<mosaic_0001>
module attributes {stable_mosaic.version = 11 : i64} {
  func.func @_proj_dropout_bits_kernel(%arg0: i32, %arg1: i32, %arg2: memref<16x32xbf16, #tpu.memory_space<vmem>>, %arg3: memref<32x128xbf16, #tpu.memory_space<vmem>>, %arg4: memref<16x128xi32, #tpu.memory_space<vmem>>, %arg5: memref<16x128xf32, #tpu.memory_space<vmem>>) attributes {dimension_semantics = [#tpu.dimension_semantics<parallel>, #tpu.dimension_semantics<parallel>], iteration_bounds = array<i64: 1, 1>, scalar_prefetch = 0 : i64, scratch_operands = 0 : i64, tpu.core_type = #tpu.core_type<tc>, window_params = [{transform_indices = @transform_0, window_bounds = array<i64: 16, 32>}, {transform_indices = @transform_1, window_bounds = array<i64: 32, 128>}, {transform_indices = @transform_2, window_bounds = array<i64: 16, 128>}, {transform_indices = @transform_3, window_bounds = array<i64: 16, 128>}]} {
    %c0 = arith.constant 0 : index
    %c0_0 = arith.constant 0 : index
    %0 = vector.load %arg2[%c0, %c0_0] : memref<16x32xbf16, #tpu.memory_space<vmem>>, vector<16x32xbf16>
    %c0_1 = arith.constant 0 : index
    %c0_2 = arith.constant 0 : index
    %1 = vector.load %arg3[%c0_1, %c0_2] : memref<32x128xbf16, #tpu.memory_space<vmem>>, vector<32x128xbf16>
    %cst = arith.constant dense<0.000000e+00> : vector<16x128xf32>
    %2 = tpu.matmul %0, %1, %cst {dimension_numbers = #tpu.dot_dimension_numbers<[1], [0], [0], [1], [0, 0, 1, 1], [], []>} : vector<16x32xbf16>, vector<32x128xbf16>, vector<16x128xf32> -> vector<16x128xf32>
    %c0_3 = arith.constant 0 : index
    %c0_4 = arith.constant 0 : index
    %3 = vector.load %arg4[%c0_3, %c0_4] : memref<16x128xi32, #tpu.memory_space<vmem>>, vector<16x128xi32>
    %c858993459_i32 = arith.constant 858993459 : i32
    %4 = vector.broadcast %c858993459_i32 : i32 to vector<16x128xi32>
    %5 = arith.cmpi uge, %3, %4 : vector<16x128xi32>
    %cst_5 = arith.constant 1.250000e+00 : f32
    %6 = vector.broadcast %cst_5 : f32 to vector<16x128xf32>
    %7 = arith.mulf %2, %6 : vector<16x128xf32>
    %cst_6 = arith.constant 0.000000e+00 : f32
    %8 = vector.broadcast %cst_6 : f32 to vector<16x128xf32>
    %9 = arith.select %5, %7, %8 : vector<16x128xi1>, vector<16x128xf32>
    %c0_7 = arith.constant 0 : index
    %c0_8 = arith.constant 0 : index
    %10 = vector.load %arg5[%c0_7, %c0_8] : memref<16x128xf32, #tpu.memory_space<vmem>>, vector<16x128xf32>
    tpu.vector_store %arg5[%c0_7, %c0_8], %9 {strides = array<i32>} : memref<16x128xf32, #tpu.memory_space<vmem>>, vector<16x128xf32>,
    return
  }
  func.func @transform_0(%arg0: i32, %arg1: i32) -> (i32, i32) {
    %c0_i32 = arith.constant 0 : i32
    %c0_i32_0 = arith.constant 0 : i32
    return %arg0, %c0_i32 : i32, i32
  }
  func.func @transform_1(%arg0: i32, %arg1: i32) -> (i32, i32) {
    %c0_i32 = arith.constant 0 : i32
    %c0_i32_0 = arith.constant 0 : i32
    return %c0_i32, %arg1 : i32, i32
  }
  func.func @transform_2(%arg0: i32, %arg1: i32) -> (i32, i32) {
    %c0_i32 = arith.constant 0 : i32
    return %arg0, %arg1 : i32, i32
  }
  func.func @transform_3(%arg0: i32, %arg1: i32) -> (i32, i32) {
    %c0_i32 = arith.constant 0 : i32
    return %arg0, %arg1 : i32, i32
  }
}

</mosaic_0001>

<bundles_post_ra>
// kernel: tpu_custom_call.1
= control target key start
LH: loop header
LB: loop body
LE: loop exit
PB: predicated region body
PF: predicated region fallthrough
CT: control target
= control target key end

     0   :  { %8 = vsyncpa [#allocation3], 0  ;;  %s312_s0 = inlined_call_operand.hbm [shape: bf16[16,32], index: 0, kind: input, shape index: {}]   ;;  %s313_s1 = inlined_call_operand.hbm [shape: bf16[32,128], index: 1, kind: input, shape index: {}]   ;;  %s314_s2 = inlined_call_operand.hbm [shape: u32[16,128], index: 2, kind: input, shape index: {}]   ;;  %s315_s3 = inlined_call_operand.hbm [shape: f32[16,128], index: 3, kind: output, shape index: {}]  }
   0x1   :  { %9 = vsyncpa [#allocation6], 0 }
   0x2   :  { %10 = vsyncpa [#allocation4], 0  ;;  %s28_s14 = sshll.u32 %s313_s1, 4  ;;  %s266_s15 = smov [#allocation5]   ;;  %s29_s14 = int_to_ptr.hbm [resolvable:$true] %s28_s14 }
   0x3   :  { %s30_s16 = sshll.u32 %s266_s15, 4  ;;  %s15_s19 = sshll.u32 %s312_s0, 4  ;;  %s31_s16 = int_to_ptr.vmem [resolvable:$true] %s30_s16  ;;  %s16_s19 = int_to_ptr.hbm [resolvable:$true] %s15_s19 }
   0x4   :  { %s267_s20 = smov 64   ;;  %s268_s21 = smov 4  }
   0x5   :  { %36 = dma.hbm_to_vmem [thread:$0]  %s29_s14, 256, %s31_s16, [#allocation6], %s267_s20, %s267_s20, %s268_s21  }
   0x6   :  { %s269_s22 = smov [#allocation2]   ;;  %s41_s26 = sshll.u32 %s314_s2, 4  ;;  %s42_s26 = int_to_ptr.hbm [resolvable:$true] %s41_s26 }
   0x7   :  { %s17_s23 = sshll.u32 %s269_s22, 4  ;;  %s270_s1 = smov [#allocation7]   ;;  %s18_s23 = int_to_ptr.vmem [resolvable:$true] %s17_s23 }
   0x8   :  { %23 = dma.hbm_to_vmem [thread:$0]  %s16_s19, 128, %s18_s23, [#allocation3], %s267_s20, %s267_s20, %s268_s21  }
   0x9   :  { %s43_s27 = sshll.u32 %s270_s1, 4  ;;  %s271_s28 = smov 128   ;;  %s44_s27 = int_to_ptr.vmem [resolvable:$true] %s43_s27 }
   0xa   :  { %s272_s29 = smov 8  }
   0xb   :  { %49 = dma.hbm_to_vmem [thread:$0]  %s42_s26, 256, %s44_s27, [#allocation6], %s271_s28, %s271_s28, %s272_s29  }
   0xc   :  { %260 = dma.done.wait [#allocation3], 128  }
   0xd   :  { %261 = vsyncadd [#allocation3], 4294967168 }
   0xe   :  { %262 = dma.done.wait [#allocation6], 512  }
   0xf   :  { %263 = vsyncadd [#allocation6], 4294966784  ;;  %v155_v0 = vld [vmem:[#allocation5 + $0x8] sm:$0xff]  ;;  %v154_v1 = vld [vmem:[#allocation5] sm:$0xff]  ;;  %vm86_vm0 = vcmask 261120   ;;  %s273_s0 = smov [#allocation8]  }
  0x10   :  { %96 = vmatpush.bf16.msra.mxu0 %v155_v0  ;;  %v153_v2 = vld [vmem:[#allocation2] sm:$0xff]  ;;  %v104_v3 = vld [vmem:[#allocation7] sm:$0xff]  ;;  %s122_s2 = sshll.u32 %s273_s0, 4  ;;  %s124_s5 = sshll.u32 %s315_s3, 4  ;;  %s123_s2 = int_to_ptr.vmem [resolvable:$true] %s122_s2  ;;  %s125_s5 = int_to_ptr.hbm [resolvable:$true] %s124_s5 }
  0x11   :  { %v151_v4 = vxor.u32 2147483648, %v104_v3  ;;  %v105_v7 = vld [vmem:[#allocation7 + $0x8] sm:$0xff] }
  0x12   :  { %v152_v9 = vxor.u32 2147483648, %v105_v7 }
  0x13   :  { %vm108_vm1 = vcmp.ge.s32.totalorder %v151_v4, 3006477107 }
  0x14   :  { %97 = vmatpush.bf16.msra.mxu0 %v154_v1  ;;  %vm111_vm2 = vcmp.ge.s32.totalorder %v152_v9, 3006477107 }
  0x17   :  { %150 = vmatmul.msk.bf16.vlgmr.msra.gmra.mxu0 %vm86_vm0, %v153_v2 }
  0x94   :  { %v99_v5 = vpop.f32.mrf.mxu0 }
  0x95   :  { %v112_v6 = vmul.f32 1.25, %v99_v5 }
  0x97   :  { %v114_v8 = vsel %vm108_vm1, %v112_v6, 0.0 }
  0x98   :  { %116 = vst [vmem:[#allocation8] sm:$0xff] %v114_v8 }
  0x9c   :  { %v101_v10 = vpop.f32.mrf.mxu0 }
  0x9d   :  { %v113_v11 = vmul.f32 1.25, %v101_v10 }
  0x9f   :  { %v115_v12 = vsel %vm111_vm2, %v113_v11, 0.0 }
  0xa0   :  { %117 = vst [vmem:[#allocation8 + $0x8] sm:$0xff] %v115_v12 }
  0xa1   :  { %130 = dma.vmem_to_hbm [thread:$0]  %s123_s2, 256, %s125_s5, [#allocation4], %s271_s28, %s271_s28, %s272_s29  }
  0xa2   :  { %264 = dma.done.wait [#allocation4], 256  }
  0xa3   :  { %265 = vsyncadd [#allocation4], 4294967040 }
  0xa4   :  { %135 = vsyncpa [#allocation3], 1 }
  0xa5   :  { %136 = vsyncpa [#allocation6], 1 }
  0xa6   :  { %137 = vsyncpa [#allocation4], 1 }

</bundles_post_ra>
